<compile_context>
chip_gen: v5e
topology: v5e:2x2
jax: 0.10.0
libtpu: 0.0.40
codegen_flags: <defaults>
</compile_context>

<pallas_src>
import functools

import jax
import jax.numpy as jnp
from jax.experimental import pallas as pl
from jax.experimental.pallas import tpu as pltpu


def _tpu_budget():
    """(vmem_capacity_bytes, tensorcores_per_chip) with conservative fallbacks."""
    vmem_cap = 64 * 1024 * 1024   # smallest current per-TC VMEM (v7x)
    n_cores = 2                   # harmless tiny serial split on 1-TC chips
    try:
        info = pltpu.get_tpu_info()
        vmem_cap = int(getattr(info, "vmem_capacity_bytes", vmem_cap))
        for attr in ("num_cores", "tensorcores_per_chip", "num_tensorcores",
                     "cores_per_chip"):
            v = getattr(info, attr, None)
            if v:
                n_cores = max(1, int(v))
                break
    except Exception:
        pass
    return vmem_cap, n_cores


def _focal_loss_kernel(x_ref, t_ref, o_ref, *, alpha, gamma, logits, batch,
                       tile_b, tiles_per_core):
    c_id = pl.program_id(0)            # core shard ("parallel")
    i_id = pl.program_id(1)            # batch tile within shard ("arbitrary")
    tile_idx = c_id * tiles_per_core + i_id   # logical (unclamped) tile index

    x = x_ref[...].astype(jnp.float32)             # (TB, C), widened on-chip
    t = t_ref[...]                                 # (TB, 1) int32
    tb, c = x.shape

    # one-hot via iota comparison (no gather needed)
    cls_idx = jax.lax.broadcasted_iota(jnp.int32, (tb, c), 1)
    one_hot = (cls_idx == t).astype(jnp.float32)   # (TB, C)

    if logits:
        # Fused softmax-gather: one (TB,C)-wide exp, everything else is (TB,1).
        m = jnp.max(x, axis=1, keepdims=True)                      # (TB, 1)
        e = jnp.exp(x - m)                                         # (TB, C) EUP
        sumexp = jnp.sum(e, axis=1, keepdims=True)                 # (TB, 1)
        e_t = jnp.sum(e * one_hot, axis=1, keepdims=True)          # (TB, 1)
        pt = e_t / sumexp          # softmax probability of the target class
    else:
        pt = jnp.sum(x * one_hot, axis=1, keepdims=True)           # (TB, 1)

    # ce == -sum(one_hot * log(p + 1e-9)) == -log(pt + 1e-9).  The 1e-9 eps is
    # kept deliberately to match the reference's saturation semantics.
    ce = -jnp.log(pt + 1e-9)                                       # (TB, 1)

    # Focal term: integer gamma -> VPU multiply chain, else pow (EUP).
    base = 1.0 - pt
    g = float(gamma)
    if g == int(g) and 0 <= int(g) <= 8:
        focal_term = jnp.ones_like(base)
        for _ in range(int(g)):
            focal_term = focal_term * base
    else:
        focal_term = base ** g

    focal = alpha * focal_term * ce                                # (TB, 1)

    # Mask rows beyond the true batch (padded last tile / over-assigned shard).
    row = jax.lax.broadcasted_iota(jnp.int32, (tb, 1), 0)
    valid = (tile_idx * tile_b + row) < batch
    focal = jnp.where(valid, focal, 0.0)

    partial = jnp.sum(focal, axis=0, keepdims=True)                # (1, 1)

    @pl.when(i_id == 0)
    def _init():
        o_ref[...] = jnp.zeros_like(o_ref)

    o_ref[...] += partial.reshape(o_ref.shape)


def focal_loss_multi(inputs, targets, alpha=1.0, gamma=2.0, logits=True,
                     reduction="mean", tile_b=None, core_shards=None):
    """Pallas implementation of FocalLoss_multi.forward ('mean'/'sum')."""
    B, C = inputs.shape
    t2d = targets.astype(jnp.int32).reshape(B, 1)

    if reduction == "mean":
        scale = 1.0 / float(B)
    elif reduction == "sum":
        scale = 1.0
    else:
        # TODO(synk): reduction='none' needs a per-sample output block.
        raise NotImplementedError("only 'mean' and 'sum' reductions supported")

    vmem_cap, n_cores = _tpu_budget()
    itemsize = jnp.dtype(inputs.dtype).itemsize
    lane_c = ((C + 127) // 128) * 128           # lane padding of the C axis
    # Resident VMEM bytes per batch row: lane-padded input row + the (TB,1)
    # int32 targets row (which also pads to 128 lanes).
    vmem_row_bytes = lane_c * itemsize + 128 * 4

    if tile_b is None:
        # Byte-targeted, dtype- and generation-aware tile: spend ~1/12 of the
        # chip's VMEM (capped at 6 MiB) per (input + targets) block, so the
        # double-buffered pair stays well inside every generation's budget
        # while keeping per-step HBM blocks large enough to amortize the
        # ~0.35 us grid-step overhead.
        per_step_budget = min(6 << 20, max(2 << 20, vmem_cap // 12))
        tile_b = (per_step_budget // vmem_row_bytes) // 8 * 8
        tile_b = int(max(8, min(tile_b, ((B + 7) // 8) * 8)))
    num_tiles = pl.cdiv(B, tile_b)

    # Leading "parallel" axis: one resident accumulator per TensorCore
    # (2x on v7x megacore; a size-1 axis / tiny serial split elsewhere).
    if core_shards is None:
        core_shards = n_cores
    core_shards = int(max(1, min(int(core_shards), num_tiles)))
    tiles_per_core = pl.cdiv(num_tiles, core_shards)

    # Scoped-VMEM limit: double-buffered input + targets blocks + slack,
    # clamped under the smallest physical VMEM (64 MiB on v7x).
    blk_rows = ((tile_b + 7) // 8) * 8
    need = 2 * blk_rows * vmem_row_bytes + (4 << 20)
    vmem_limit = int(min(max(need, 32 << 20), max(vmem_cap - (4 << 20), need)))

    kernel = functools.partial(
        _focal_loss_kernel,
        alpha=float(alpha),
        gamma=float(gamma),
        logits=bool(logits),
        batch=B,
        tile_b=tile_b,
        tiles_per_core=tiles_per_core,
    )

    last_tile = num_tiles - 1

    def in_map(cshard, i):
        # Clamp the logical tile index so the last shard's over-assigned
        # steps re-read a valid block (fully masked off inside the kernel).
        return (jnp.minimum(cshard * tiles_per_core + i, last_tile), 0)

    out = pl.pallas_call(
        kernel,
        out_shape=jax.ShapeDtypeStruct((core_shards, 1, 1), jnp.float32),
        grid=(core_shards, tiles_per_core),
        in_specs=[
            pl.BlockSpec((tile_b, C), in_map),   # inputs, native dtype
            pl.BlockSpec((tile_b, 1), in_map),   # targets (int32)
        ],
        out_specs=pl.BlockSpec((1, 1, 1), lambda cshard, i: (cshard, 0, 0)),
        compiler_params=pltpu.CompilerParams(
            dimension_semantics=("parallel", "arbitrary"),
            vmem_limit_bytes=vmem_limit),
    )(inputs, t2d)

    # Per-core partials -> scalar; scale applied once (sum-then-divide).
    return jnp.sum(out) * scale


def _reference(inputs, targets, alpha=1.0, gamma=2.0, logits=True,
               reduction="mean"):
    x = inputs.astype(jnp.float32)
    p = jax.nn.softmax(x, axis=1) if logits else x
    oh = jax.nn.one_hot(targets, x.shape[1], dtype=jnp.float32)
    ce = -jnp.sum(oh * jnp.log(p + 1e-9), axis=1)
    pt = jnp.sum(p * oh, axis=1)
    fl = alpha * (1.0 - pt) ** gamma * ce
    return jnp.mean(fl) if reduction == "mean" else jnp.sum(fl)


if __name__ == "__main__":
    key = jax.random.PRNGKey(0)
    k1, k2, k3, k4 = jax.random.split(key, 4)

    # Primary case: batch=8, num_classes=16, logits -> softmax path.
    B, C = 8, 16
    inputs = jax.random.normal(k1, (B, C), dtype=jnp.float32)
    targets = jax.random.randint(k2, (B,), 0, C, dtype=jnp.int32)

    loss = focal_loss_multi(inputs, targets, alpha=1.0, gamma=2.0,
                            logits=True, reduction="mean")
    loss = jax.block_until_ready(loss)
    ref = _reference(inputs, targets)
    assert jnp.allclose(loss, ref, rtol=1e-5, atol=1e-5), (loss, ref)

    # Multi-tile + ragged last tile + forced 2-way core split: exercises the
    # per-shard accumulators, the clamped index_map and the row mask
    # (B=21, tile_b=8 -> 3 tiles over 2 shards; last logical tile is masked).
    B2, C2 = 21, 16
    inputs2 = jax.random.normal(k3, (B2, C2), dtype=jnp.float32)
    targets2 = jax.random.randint(k4, (B2,), 0, C2, dtype=jnp.int32)

    loss2 = focal_loss_multi(inputs2, targets2, alpha=1.0, gamma=2.0,
                             logits=True, reduction="mean",
                             tile_b=8, core_shards=2)
    loss2 = jax.block_until_ready(loss2)
    ref2 = _reference(inputs2, targets2)
    assert jnp.allclose(loss2, ref2, rtol=1e-5, atol=1e-5), (loss2, ref2)

    # 'sum' reduction on the default (auto-tiled) path.
    loss3 = focal_loss_multi(inputs2, targets2, reduction="sum")
    loss3 = jax.block_until_ready(loss3)
    ref3 = _reference(inputs2, targets2, reduction="sum")
    assert jnp.allclose(loss3, ref3, rtol=1e-5, atol=1e-5), (loss3, ref3)

    print("KERNEL_OK")
</pallas_src>

<mosaic_0001>
module attributes {stable_mosaic.version = 11 : i64} {
  func.func @_focal_loss_kernel(%arg0: i32, %arg1: i32, %arg2: memref<8x16xf32, #tpu.memory_space<vmem>>, %arg3: memref<8x1xi32, #tpu.memory_space<vmem>>, %arg4: memref<1x1x1xf32, #tpu.memory_space<vmem>>) attributes {dimension_semantics = [#tpu.dimension_semantics<parallel>, #tpu.dimension_semantics<arbitrary>], iteration_bounds = array<i64: 1, 1>, scalar_prefetch = 0 : i64, scratch_operands = 0 : i64, tpu.core_type = #tpu.core_type<tc>, window_params = [{transform_indices = @transform_0, window_bounds = array<i64: 8, 16>}, {transform_indices = @transform_1, window_bounds = array<i64: 8, 1>}, {transform_indices = @transform_2, window_bounds = array<i64: 1, 1, 1>}]} {
    %c1_i32 = arith.constant 1 : i32
    %0 = arith.muli %arg0, %c1_i32 : i32
    %1 = arith.addi %0, %arg1 : i32
    %c0 = arith.constant 0 : index
    %c0_0 = arith.constant 0 : index
    %2 = vector.load %arg2[%c0, %c0_0] : memref<8x16xf32, #tpu.memory_space<vmem>>, vector<8x16xf32>
    %c0_1 = arith.constant 0 : index
    %c0_2 = arith.constant 0 : index
    %3 = vector.load %arg3[%c0_1, %c0_2] : memref<8x1xi32, #tpu.memory_space<vmem>>, vector<8x1xi32>
    %4 = tpu.iota {dimensions = array<i32: 1>} : vector<8x16xi32>
    %5 = vector.broadcast %3 : vector<8x1xi32> to vector<8x16xi32>
    %6 = arith.cmpi eq, %4, %5 : vector<8x16xi32>
    %7 = arith.extui %6 : vector<8x16xi1> to vector<8x16xi32>
    %8 = arith.sitofp %7 : vector<8x16xi32> to vector<8x16xf32>
    %cst = arith.constant dense<0xFF800000> : vector<8xf32>
    %9 = vector.multi_reduction <maximumf>, %2, %cst [1] : vector<8x16xf32> to vector<8xf32>
    %10 = vector.shape_cast %9 : vector<8xf32> to vector<8x1xf32>
    %11 = vector.broadcast %10 : vector<8x1xf32> to vector<8x16xf32>
    %12 = arith.subf %2, %11 : vector<8x16xf32>
    %13 = math.exp %12 : vector<8x16xf32>
    %cst_3 = arith.constant dense<0.000000e+00> : vector<8xf32>
    %14 = vector.multi_reduction <add>, %13, %cst_3 [1] : vector<8x16xf32> to vector<8xf32>
    %15 = vector.shape_cast %14 : vector<8xf32> to vector<8x1xf32>
    %16 = arith.mulf %13, %8 : vector<8x16xf32>
    %cst_4 = arith.constant dense<0.000000e+00> : vector<8xf32>
    %17 = vector.multi_reduction <add>, %16, %cst_4 [1] : vector<8x16xf32> to vector<8xf32>
    %18 = vector.shape_cast %17 : vector<8xf32> to vector<8x1xf32>
    %19 = arith.divf %18, %15 : vector<8x1xf32>
    %cst_5 = arith.constant 9.99999971E-10 : f32
    %20 = vector.broadcast %cst_5 : f32 to vector<8x1xf32>
    %21 = arith.addf %19, %20 : vector<8x1xf32>
    %22 = math.log %21 : vector<8x1xf32>
    %cst_6 = arith.constant 0.000000e+00 : f32
    %23 = vector.broadcast %cst_6 : f32 to vector<8x1xf32>
    %24 = arith.subf %23, %22 : vector<8x1xf32>
    %cst_7 = arith.constant 1.000000e+00 : f32
    %25 = vector.broadcast %cst_7 : f32 to vector<8x1xf32>
    %26 = arith.subf %25, %19 : vector<8x1xf32>
    %cst_8 = arith.constant 1.000000e+00 : f32
    %27 = vector.broadcast %cst_8 : f32 to vector<8x1xf32>
    %28 = arith.mulf %27, %26 : vector<8x1xf32>
    %29 = arith.mulf %28, %26 : vector<8x1xf32>
    %cst_9 = arith.constant 1.000000e+00 : f32
    %30 = vector.broadcast %cst_9 : f32 to vector<8x1xf32>
    %31 = arith.mulf %30, %29 : vector<8x1xf32>
    %32 = arith.mulf %31, %24 : vector<8x1xf32>
    %33 = tpu.iota {dimensions = array<i32: 0>} : vector<8x1xi32>
    %c8_i32 = arith.constant 8 : i32
    %34 = arith.muli %1, %c8_i32 : i32
    %35 = vector.broadcast %34 : i32 to vector<8x1xi32>
    %36 = arith.addi %35, %33 : vector<8x1xi32>
    %c8_i32_10 = arith.constant 8 : i32
    %37 = vector.broadcast %c8_i32_10 : i32 to vector<8x1xi32>
    %38 = arith.cmpi slt, %36, %37 : vector<8x1xi32>
    %cst_11 = arith.constant 0.000000e+00 : f32
    %39 = vector.broadcast %cst_11 : f32 to vector<8x1xf32>
    %40 = arith.select %38, %32, %39 : vector<8x1xi1>, vector<8x1xf32>
    %cst_12 = arith.constant dense<0.000000e+00> : vector<1xf32>
    %41 = vector.multi_reduction <add>, %40, %cst_12 [0] : vector<8x1xf32> to vector<1xf32>
    %42 = vector.shape_cast %41 : vector<1xf32> to vector<1x1xf32>
    %c0_i32 = arith.constant 0 : i32
    %43 = arith.cmpi eq, %arg1, %c0_i32 : i32
    %44 = arith.extui %43 : i1 to i32
    %c0_i32_13 = arith.constant 0 : i32
    %45 = arith.cmpi ne, %44, %c0_i32_13 : i32
    scf.if %45 {
      %cst_20 = arith.constant 0.000000e+00 : f32
      %50 = vector.broadcast %cst_20 : f32 to vector<1x1x1xf32>
      %c0_21 = arith.constant 0 : index
      %c0_22 = arith.constant 0 : index
      %c0_23 = arith.constant 0 : index
      %51 = vector.load %arg4[%c0_21, %c0_22, %c0_23] : memref<1x1x1xf32, #tpu.memory_space<vmem>>, vector<1x1x1xf32>
      tpu.vector_store %arg4[%c0_21, %c0_22, %c0_23], %50 {strides = array<i32>} : memref<1x1x1xf32, #tpu.memory_space<vmem>>, vector<1x1x1xf32>,
    } else {
    }
    %c0_14 = arith.constant 0 : index
    %c0_15 = arith.constant 0 : index
    %c0_16 = arith.constant 0 : index
    %46 = vector.load %arg4[%c0_14, %c0_15, %c0_16] : memref<1x1x1xf32, #tpu.memory_space<vmem>>, vector<1x1x1xf32>
    %47 = vector.shape_cast %42 : vector<1x1xf32> to vector<1x1x1xf32>
    %48 = arith.addf %46, %47 : vector<1x1x1xf32>
    %c0_17 = arith.constant 0 : index
    %c0_18 = arith.constant 0 : index
    %c0_19 = arith.constant 0 : index
    %49 = vector.load %arg4[%c0_17, %c0_18, %c0_19] : memref<1x1x1xf32, #tpu.memory_space<vmem>>, vector<1x1x1xf32>
    tpu.vector_store %arg4[%c0_17, %c0_18, %c0_19], %48 {strides = array<i32>} : memref<1x1x1xf32, #tpu.memory_space<vmem>>, vector<1x1x1xf32>,
    return
  }
  func.func @transform_0(%arg0: i32, %arg1: i32) -> (i32, i32) {
    %c1_i32 = arith.constant 1 : i32
    %0 = arith.muli %arg0, %c1_i32 : i32
    %1 = arith.addi %0, %arg1 : i32
    %c0_i32 = arith.constant 0 : i32
    %2 = arith.minsi %1, %c0_i32 : i32
    %c0_i32_0 = arith.constant 0 : i32
    %c0_i32_1 = arith.constant 0 : i32
    return %2, %c0_i32_0 : i32, i32
  }
  func.func @transform_1(%arg0: i32, %arg1: i32) -> (i32, i32) {
    %c1_i32 = arith.constant 1 : i32
    %0 = arith.muli %arg0, %c1_i32 : i32
    %1 = arith.addi %0, %arg1 : i32
    %c0_i32 = arith.constant 0 : i32
    %2 = arith.minsi %1, %c0_i32 : i32
    %c0_i32_0 = arith.constant 0 : i32
    %c0_i32_1 = arith.constant 0 : i32
    return %2, %c0_i32_0 : i32, i32
  }
  func.func @transform_2(%arg0: i32, %arg1: i32) -> (i32, i32, i32) {
    %c0_i32 = arith.constant 0 : i32
    %c0_i32_0 = arith.constant 0 : i32
    %c0_i32_1 = arith.constant 0 : i32
    return %arg0, %c0_i32, %c0_i32_0 : i32, i32, i32
  }
}

</mosaic_0001>

<bundles_post_ra>
// kernel: tpu_custom_call.1
= control target key start
LH: loop header
LB: loop body
LE: loop exit
PB: predicated region body
PF: predicated region fallthrough
CT: control target
= control target key end

     0   :  { %vm77_vm0 = vcmask 130048   ;;  %s233_s0 = inlined_call_operand.vmem [shape: f32[8,16], index: 0, kind: input, shape index: {}]   ;;  %s234_s1 = inlined_call_operand.vmem [shape: s32[8,1], index: 1, kind: input, shape index: {}]   ;;  %s235_s2 = inlined_call_operand.hbm [shape: f32[1,1,1], index: 2, kind: output, shape index: {}]  }
   0x1   :  { %v67_v0 = vld [vmem:[%s233_s0] sm:$0xff] }
   0x2   :  { %7 = vsyncpa [#allocation3], 0  ;;  %v78_v1 = vsel %vm77_vm0, %v67_v0, -inf  ;;  %v201_v2 = vmov 0   ;;  %v68_v3 = vld [vmem:[%s234_s1] sm:$0xff]  ;;  %vm130_vm1 = vcmask 0   ;;  %v69_v10 = vlaneseq }
   0x3   :  { %168 = vset.pattern.permute.xlu0 %v201_v2  ;;  %v202_v4 = vmov 0.0   ;;  %s203_s0 = smov [#allocation2]   ;;  %s143_s15 = sshll.u32 %s235_s2, 4  ;;  %s144_s15 = int_to_ptr.hbm [resolvable:$true] %s143_s15 }
   0x4   :  { %79 = vmax.xlane.f32.xlu0 %v78_v1  ;;  %131 = vst.msk [vmem:[#allocation2] sm:$0x1] %vm130_vm1, %v202_v4  ;;  %v70_v11 = vand.u32 127, %v69_v10  ;;  %s141_s1 = sshll.u32 %s203_s0, 4  ;;  %s142_s1 = int_to_ptr.vmem [resolvable:$true] %s141_s1 }
   0xb   :  { %v132_v41 = vld [vmem:[#allocation2] sm:$0x1] }
  0x18   :  { %72 = vperm.xlu0 %168, %v68_v3  }
  0x77   :  { %v80_v5 = vpop.xlane.xlu0 %79 }
  0x78   :  { %v81_v6 = vsub.f32 %v67_v0, %v80_v5 }
  0x7a   :  { %v82_v7 = vmul.f32 1.442695, %v81_v6 }
  0x7c   :  { %169 = vpow2.f32 %v82_v7 }
  0x82   :  { %v170_v8 = vpop.eup %169 }
  0x83   :  { %v84_v9 = vsel %vm77_vm0, %v170_v8, 0.0 }
  0x84   :  { %85 = vadd.xlane.f32.xlu1 %v84_v9 }
  0x8a   :  { %v73_v12 = vpop.permute.xlu0 %72 }
  0x8b   :  { %vm74_vm2 = vcmp.eq.s32.totalorder %v70_v11, %v73_v12 }
  0x8c   :  { %v164_v13 = vsel %vm74_vm2, 1.0, %v202_v4 }
  0x8d   :  { %v87_v14 = vmul.f32 %v170_v8, %v164_v13 }
  0x8f   :  { %v88_v15 = vsel %vm77_vm0, %v87_v14, 0.0 }
  0x90   :  { %89 = vadd.xlane.f32.xlu1 %v88_v15 }
  0xf7   :  { %v86_v16 = vpop.xlane.xlu1 %85 }
  0xf8   :  { %171 = vrcp.f32 %v86_v16  ;;  %v102_v20 = vand.u32 2147483648, %v86_v16  ;;  %v100_v22 = vand.u32 2147483647, %v86_v16  ;;  %vm96_vm4 = vweird.f32 %v86_v16 }
  0xfa   :  { %v103_v24 = vor.u32 1.1754944e-38, %v102_v20  ;;  %vm101_vm6 = vcmp.eq.f32.partialorder %v100_v22, 8.507059e+37 }
  0xfe   :  { %v172_v17 = vpop.eup %171 }
  0xff   :  { %v92_v18 = vmul.f32 %v172_v17, %v86_v16  ;;  %vm97_vm3 = vweird.f32 %v172_v17 }
 0x100   :  { %vm98_vm5 = vmor %vm96_vm4, %vm97_vm3 }
 0x101   :  { %v93_v19 = vsub.f32 1.0, %v92_v18 }
 0x103   :  { %v94_v21 = vmul.f32 %v172_v17, %v93_v19  ;;  %v90_v27 = vpop.xlane.xlu1 %89 }
 0x105   :  { %v95_v23 = vadd.f32 %v172_v17, %v94_v21 }
 0x107   :  { %v99_v25 = vsel %vm98_vm5, %v172_v17, %v95_v23 }
 0x108   :  { %v104_v26 = vsel %vm101_vm6, %v103_v24, %v99_v25 }
 0x109   :  { %v105_v28 = vmul.f32 %v104_v26, %v90_v27 }
 0x10b   :  { %v106_v29 = vadd.f32 1e-09, %v105_v28  ;;  %v110_v30 = vsub.f32 1.0, %v105_v28 }
 0x10d   :  { %173 = vlog2.f32 %v106_v29  ;;  %v111_v34 = vmul.f32 %v110_v30, %v110_v30 }
 0x113   :  { %v174_v31 = vpop.eup %173 }
 0x114   :  { %v108_v32 = vmul.f32 0.6931472, %v174_v31 }
 0x116   :  { %v109_v33 = vsub.f32 0.0, %v108_v32 }
 0x118   :  { %v112_v35 = vmul.f32 %v111_v34, %v109_v33 }
 0x11a   :  { %v120_v36 = vrot.slane %v112_v35, 4 }
 0x11c   :  { %v121_v37 = vadd.f32 %v120_v36, %v112_v35 }
 0x11e   :  { %v122_v38 = vrot.slane %v121_v37, 2 }
 0x120   :  { %v123_v39 = vadd.f32 %v122_v38, %v121_v37 }
 0x122   :  { %v124_v40 = vrot.slane %v123_v39, 1 }
 0x124   :  { %v125_v42 = vadd.f32 %v124_v40, %v123_v39 }
 0x126   :  { %v133_v43 = vadd.f32 %v132_v41, %v125_v42 }
 0x128   :  { %135 = vst.msk [vmem:[#allocation2] sm:$0x1] %vm130_vm1, %v133_v43 }
 0x129   :  { %146 = dma.vmem_to_hbm [thread:$0]  %s142_s1, 16, %s144_s15, [#allocation3]  }
 0x12a   :  { %199 = dma.done.wait [#allocation3], 16  }
 0x12b   :  { %200 = vsyncadd [#allocation3], 4294967280 }
 0x12c   :  { %151 = vsyncpa [#allocation3], 1 }

</bundles_post_ra>
